<compile_context>
chip_gen: v6e
topology: v6e:2x2x1
jax: 0.10.0
libtpu: 0.0.40
codegen_flags: <defaults>
</compile_context>

<pallas_src>
import functools
import math

import jax
import jax.numpy as jnp
from jax.experimental import pallas as pl
from jax.experimental.pallas import tpu as pltpu


_BLOCK_BUDGET = 8 * 1024 * 1024   # target bytes per (single-buffered) input block
_VMEM_LIMIT = 48 * 1024 * 1024    # safe under v7x's 64 MiB; generous on v5e/v6e


def _sublane_base(itemsize: int) -> int:
    """Native sublane packing multiple for the dtype width."""
    return {4: 8, 2: 16, 1: 32}.get(itemsize, 8)


def _pick_block(full: int, base: int, cap: int) -> int:
    """Block extent along one axis: a multiple of `base` (or the full extent),
    never larger than ~cap.  Prefers exact divisors of `full`; otherwise the
    ragged tail is handled by a cdiv grid (clipped stores / in-kernel mask)."""
    cap = max(base, cap)
    if full <= cap:
        return full
    cap = (cap // base) * base
    t = cap
    for _ in range(4096):
        if t < base:
            break
        if full % t == 0:
            return t
        t -= base
    return cap


# ------------------------------- kernels -------------------------------------

def _reduce_mid_kernel(x_ref, o_ref, acc_ref, *, red_size, red_tile):
    """Sum the middle axis of an (a_blk, r_tile, b_tile) block into (a_blk, 1, b_tile)."""
    k = pl.program_id(2)

    @pl.when(k == 0)
    def _init():
        acc_ref[...] = jnp.zeros_like(acc_ref)

    x = x_ref[...].astype(acc_ref.dtype)
    if red_size % red_tile != 0:
        # Mask the ragged tail along the reduced axis (OOB reads are unspecified).
        iota = jax.lax.broadcasted_iota(jnp.int32, x.shape, 1)
        x = jnp.where(iota + k * red_tile < red_size, x, 0)
    acc_ref[...] += jnp.sum(x, axis=1, keepdims=True)

    @pl.when(k == pl.num_programs(2) - 1)
    def _finalize():
        o_ref[...] = acc_ref[...].astype(o_ref.dtype)


def _reduce_last_kernel(x_ref, o_ref, acc_ref, *, red_size, red_tile, lane_acc):
    """Sum the lane axis of an (a_tile, r_tile) block into (a_tile, 1)."""
    k = pl.program_id(1)

    @pl.when(k == 0)
    def _init():
        acc_ref[...] = jnp.zeros_like(acc_ref)

    x = x_ref[...].astype(acc_ref.dtype)
    if red_size % red_tile != 0:
        iota = jax.lax.broadcasted_iota(jnp.int32, x.shape, 1)
        x = jnp.where(iota + k * red_tile < red_size, x, 0)

    if lane_acc:
        # Steady state: only VPU adds across 128-lane groups; the cross-lane
        # (XLU) reduce happens once, in the finalize step.
        groups = red_tile // 128
        partial = x[:, 0:128]
        for g in range(1, groups):
            partial = partial + x[:, g * 128:(g + 1) * 128]
        acc_ref[...] += partial
    else:
        acc_ref[...] += jnp.sum(x, axis=1, keepdims=True)

    @pl.when(k == pl.num_programs(1) - 1)
    def _finalize():
        if lane_acc:
            o_ref[...] = jnp.sum(acc_ref[...], axis=1, keepdims=True).astype(o_ref.dtype)
        else:
            o_ref[...] = acc_ref[...].astype(o_ref.dtype)


# ------------------------------- wrapper --------------------------------------

@functools.partial(jax.jit, static_argnames=("dim",))
def dim_reduce_sum(x, dim: int):
    """torch.sum(x, dim=dim) implemented with a Pallas TPU kernel."""
    ndim = x.ndim
    dim = dim % ndim
    shape = x.shape
    out_shape_nd = shape[:dim] + shape[dim + 1:]

    A = math.prod(shape[:dim])
    R = shape[dim]
    B = math.prod(shape[dim + 1:])

    if jnp.issubdtype(x.dtype, jnp.floating):
        acc_dtype = jnp.float32
        out_dtype = x.dtype
    else:
        # TODO(synk): torch.sum promotes integer/bool inputs to int64; we use
        # int32 (JAX default-x64-off promotion), which may overflow sooner.
        acc_dtype = jnp.int32
        out_dtype = jnp.int32

    itemsize = jnp.dtype(x.dtype).itemsize
    out_itemsize = jnp.dtype(out_dtype).itemsize
    sub_base = _sublane_base(itemsize)

    if B == 1:
        # ---- reduced dim is the last (lane) axis: view as (A, R) -------------
        x2 = x.reshape(A, R)
        r_tile = _pick_block(R, 128, max(128, _BLOCK_BUDGET // (sub_base * itemsize)))
        lane_acc = (r_tile >= 128) and (r_tile % 128 == 0)
        a_cap = max(sub_base, _BLOCK_BUDGET // max(1, r_tile * itemsize))
        if lane_acc:
            # Keep the lane-wide f32 accumulator within ~one block budget too.
            a_cap = min(a_cap, max(sub_base, _BLOCK_BUDGET // (128 * 4)))
        a_tile = _pick_block(A, sub_base, a_cap)
        # v7x: make sure both TensorCores get at least one parallel slice.
        if pl.cdiv(A, a_tile) < 2 and A >= 2:
            cand = sub_base * pl.cdiv(pl.cdiv(A, 2), sub_base)
            if cand < a_tile:
                a_tile = cand
        grid = (pl.cdiv(A, a_tile), pl.cdiv(R, r_tile))
        acc_shape = (a_tile, 128) if lane_acc else (a_tile, 1)

        kernel = functools.partial(
            _reduce_last_kernel, red_size=R, red_tile=r_tile, lane_acc=lane_acc)

        out = pl.pallas_call(
            kernel,
            out_shape=jax.ShapeDtypeStruct((A, 1), out_dtype),
            grid_spec=pltpu.PrefetchScalarGridSpec(
                num_scalar_prefetch=0,
                grid=grid,
                in_specs=[pl.BlockSpec((a_tile, r_tile), lambda i, k: (i, k))],
                out_specs=pl.BlockSpec((a_tile, 1), lambda i, k: (i, 0)),
                scratch_shapes=[pltpu.VMEM(acc_shape, acc_dtype)],
            ),
            compiler_params=pltpu.CompilerParams(
                dimension_semantics=("parallel", "arbitrary"),
                vmem_limit_bytes=_VMEM_LIMIT,
            ),
            cost_estimate=pl.CostEstimate(
                flops=A * R,
                transcendentals=0,
                bytes_accessed=A * R * itemsize + A * out_itemsize,
            ),
        )(x2)
        return out.reshape(out_shape_nd)

    # ---- general case: view as (A, R, B), reduce the middle axis --------------
    x3 = x.reshape(A, R, B)
    b_tile = _pick_block(B, 128, max(128, _BLOCK_BUDGET // (sub_base * itemsize)))
    r_tile = _pick_block(R, sub_base,
                         max(sub_base, _BLOCK_BUDGET // max(1, b_tile * itemsize)))
    a_blk = _pick_block(A, 1,
                        max(1, _BLOCK_BUDGET // max(1, r_tile * b_tile * itemsize)))
    # v7x: ensure >= 2 parallel grid slices so both TensorCores stream data.
    if pl.cdiv(A, a_blk) * pl.cdiv(B, b_tile) < 2:
        if A >= 2:
            a_blk = pl.cdiv(A, 2)
        elif B > 128 and b_tile > 128:
            cand = 128 * pl.cdiv(pl.cdiv(B, 2), 128)
            if cand < b_tile:
                b_tile = cand
    grid = (pl.cdiv(A, a_blk), pl.cdiv(B, b_tile), pl.cdiv(R, r_tile))

    kernel = functools.partial(_reduce_mid_kernel, red_size=R, red_tile=r_tile)

    out = pl.pallas_call(
        kernel,
        out_shape=jax.ShapeDtypeStruct((A, 1, B), out_dtype),
        grid_spec=pltpu.PrefetchScalarGridSpec(
            num_scalar_prefetch=0,
            grid=grid,
            in_specs=[pl.BlockSpec((a_blk, r_tile, b_tile), lambda a, j, k: (a, k, j))],
            out_specs=pl.BlockSpec((a_blk, 1, b_tile), lambda a, j, k: (a, 0, j)),
            scratch_shapes=[pltpu.VMEM((a_blk, 1, b_tile), acc_dtype)],
        ),
        compiler_params=pltpu.CompilerParams(
            dimension_semantics=("parallel", "parallel", "arbitrary"),
            vmem_limit_bytes=_VMEM_LIMIT,
        ),
        cost_estimate=pl.CostEstimate(
            flops=A * R * B,
            transcendentals=0,
            bytes_accessed=A * R * B * itemsize + A * B * out_itemsize,
        ),
    )(x3)
    return out.reshape(out_shape_nd)


class DimReduceSum:
    """JAX/Pallas counterpart of the PyTorch _DimReduceModule (sum reduction)."""

    def __init__(self, dim: int) -> None:
        self.dim = dim

    def __call__(self, x):
        return dim_reduce_sum(x, dim=self.dim)

    def extra_repr(self) -> str:
        return f"dim={self.dim}"


if __name__ == "__main__":
    key = jax.random.PRNGKey(0)

    # Small NCHW input consistent with a typical conv-graph tensor.
    x = jax.random.normal(key, (2, 4, 16, 16), dtype=jnp.float32)

    # Exercise every dim (dim=0/1/2 -> mid-axis path, dim=-1 -> last-axis path).
    for d in (0, 1, 2, -1):
        out = jax.block_until_ready(DimReduceSum(dim=d)(x))
        ref = jnp.sum(x, axis=d)
        assert out.shape == ref.shape, (d, out.shape, ref.shape)
        assert out.dtype == ref.dtype, (d, out.dtype, ref.dtype)
        assert jnp.allclose(out, ref, atol=1e-5, rtol=1e-5), d

    # Exercise the lane-wide-accumulator last-axis path (R a multiple of 128).
    y = jax.random.normal(jax.random.PRNGKey(1), (16, 256), dtype=jnp.float32)
    out_y = jax.block_until_ready(DimReduceSum(dim=-1)(y))
    ref_y = jnp.sum(y, axis=-1)
    assert out_y.shape == ref_y.shape, (out_y.shape, ref_y.shape)
    assert jnp.allclose(out_y, ref_y, atol=1e-4, rtol=1e-5)

    print("KERNEL_OK")
</pallas_src>

<mosaic_0001>
module attributes {stable_mosaic.version = 11 : i64} {
  func.func @_reduce_mid_kernel(%arg0: i32, %arg1: i32, %arg2: i32, %arg3: memref<1x2x512xf32, #tpu.memory_space<vmem>>, %arg4: memref<1x1x512xf32, #tpu.memory_space<vmem>>, %arg5: memref<1x1x512xf32, #tpu.memory_space<vmem>>) attributes {dimension_semantics = [#tpu.dimension_semantics<parallel>, #tpu.dimension_semantics<parallel>, #tpu.dimension_semantics<arbitrary>], iteration_bounds = array<i64: 1, 2, 1>, scalar_prefetch = 0 : i64, scratch_operands = 1 : i64, tpu.core_type = #tpu.core_type<tc>, window_params = [{transform_indices = @transform_0, window_bounds = array<i64: 1, 2, 512>}, {transform_indices = @transform_1, window_bounds = array<i64: 1, 1, 512>}]} {
    %c0_i32 = arith.constant 0 : i32
    %0 = arith.cmpi eq, %arg2, %c0_i32 : i32
    %1 = arith.extui %0 : i1 to i32
    %c0_i32_0 = arith.constant 0 : i32
    %2 = arith.cmpi ne, %1, %c0_i32_0 : i32
    scf.if %2 {
      %cst_11 = arith.constant 0.000000e+00 : f32
      %12 = vector.broadcast %cst_11 : f32 to vector<1x1x512xf32>
      %c0_12 = arith.constant 0 : index
      %c0_13 = arith.constant 0 : index
      %c0_14 = arith.constant 0 : index
      %13 = vector.load %arg5[%c0_12, %c0_13, %c0_14] : memref<1x1x512xf32, #tpu.memory_space<vmem>>, vector<1x1x512xf32>
      tpu.vector_store %arg5[%c0_12, %c0_13, %c0_14], %12 {strides = array<i32>} : memref<1x1x512xf32, #tpu.memory_space<vmem>>, vector<1x1x512xf32>,
    } else {
    }
    %c0 = arith.constant 0 : index
    %c0_1 = arith.constant 0 : index
    %c0_2 = arith.constant 0 : index
    %3 = vector.load %arg3[%c0, %c0_1, %c0_2] : memref<1x2x512xf32, #tpu.memory_space<vmem>>, vector<1x2x512xf32>
    %c0_3 = arith.constant 0 : index
    %c0_4 = arith.constant 0 : index
    %c0_5 = arith.constant 0 : index
    %4 = vector.load %arg5[%c0_3, %c0_4, %c0_5] : memref<1x1x512xf32, #tpu.memory_space<vmem>>, vector<1x1x512xf32>
    %cst = arith.constant dense<0.000000e+00> : vector<1x512xf32>
    %5 = vector.multi_reduction <add>, %3, %cst [1] : vector<1x2x512xf32> to vector<1x512xf32>
    %6 = vector.shape_cast %5 : vector<1x512xf32> to vector<1x1x512xf32>
    %7 = arith.addf %4, %6 : vector<1x1x512xf32>
    %c0_6 = arith.constant 0 : index
    %c0_7 = arith.constant 0 : index
    %c0_8 = arith.constant 0 : index
    %8 = vector.load %arg5[%c0_6, %c0_7, %c0_8] : memref<1x1x512xf32, #tpu.memory_space<vmem>>, vector<1x1x512xf32>
    tpu.vector_store %arg5[%c0_6, %c0_7, %c0_8], %7 {strides = array<i32>} : memref<1x1x512xf32, #tpu.memory_space<vmem>>, vector<1x1x512xf32>,
    %c0_i32_9 = arith.constant 0 : i32
    %9 = arith.cmpi eq, %arg2, %c0_i32_9 : i32
    %10 = arith.extui %9 : i1 to i32
    %c0_i32_10 = arith.constant 0 : i32
    %11 = arith.cmpi ne, %10, %c0_i32_10 : i32
    scf.if %11 {
      %c0_11 = arith.constant 0 : index
      %c0_12 = arith.constant 0 : index
      %c0_13 = arith.constant 0 : index
      %12 = vector.load %arg5[%c0_11, %c0_12, %c0_13] : memref<1x1x512xf32, #tpu.memory_space<vmem>>, vector<1x1x512xf32>
      %c0_14 = arith.constant 0 : index
      %c0_15 = arith.constant 0 : index
      %c0_16 = arith.constant 0 : index
      %13 = vector.load %arg4[%c0_14, %c0_15, %c0_16] : memref<1x1x512xf32, #tpu.memory_space<vmem>>, vector<1x1x512xf32>
      tpu.vector_store %arg4[%c0_14, %c0_15, %c0_16], %12 {strides = array<i32>} : memref<1x1x512xf32, #tpu.memory_space<vmem>>, vector<1x1x512xf32>,
    } else {
    }
    return
  }
  func.func @transform_0(%arg0: i32, %arg1: i32, %arg2: i32) -> (i32, i32, i32) {
    %c0_i32 = arith.constant 0 : i32
    return %arg0, %arg2, %arg1 : i32, i32, i32
  }
  func.func @transform_1(%arg0: i32, %arg1: i32, %arg2: i32) -> (i32, i32, i32) {
    %c0_i32 = arith.constant 0 : i32
    %c0_i32_0 = arith.constant 0 : i32
    return %arg0, %c0_i32, %arg1 : i32, i32, i32
  }
}

</mosaic_0001>

<bundles_post_ra>
// kernel: dim_reduce_sum.1
= control target key start
LH: loop header
LB: loop body
LE: loop exit
PB: predicated region body
PF: predicated region fallthrough
CT: control target
= control target key end

     0   :  { %s442_s6 = smov 0   ;;  %s444_s7 = smov 0   ;;  %s489_s0 = inlined_call_operand.vmem [shape: f32[1,2,1024], index: 0, kind: input, shape index: {}]   ;;  %s490_s1 = inlined_call_operand.vmem [shape: f32[1,1,1024], index: 1, kind: output, shape index: {}]  }
   0x1   :  { %s446_s8 = smov 0  }
   0x2 LB: > { %s26_s9 = sadd.s32 1, %s423_s7  ;;  %p371_p0 = scmp.ge.s32.totalorder %s427_s8, 1  ;;  %s427_s8 = sphi %s446_s8, %s11_s8   ;;  %s423_s7 = sphi %s444_s7, %s494_s7   ;;  %s419_s6 = sphi %s442_s6, %s493_s6  }
   0x3   : > { %p28_p1 = scmp.ge.s32.totalorder %s26_s9, 2  ;;  %p121_p2 = scmp.lt.s32.totalorder %s427_s8, 3 }
   0x5   : > { %s496_s9 = smov (%p28_p1, %s26_s9), 0  ;;  %p122_p3 = pnand %p371_p0, %p121_p2 }
   0x6   : > { %s372_s10 = sshll.u32 (!%p122_p3), %s419_s6, 2 }
   0x7   : > { %125 = sbr.rel (%p122_p3) target bundleno = 55 (0x37), region = 24  ;;  %p157_p4 = scmp.lt.s32.totalorder (!%p122_p3), %s372_s10, 7 }
   0xc   : > { %v179_v0 = vlaneseq  ;;  %v429_v1 = vmov 1983009808   ;;  %s498_s10 = smov (!%p157_p4, %s372_s10), 7  ;;  %v430_v5 = vmov 0.0   ;;  %vm208_vm1 = vcmask 1041408  }
   0xd   : > { %v189_v2 = vunpack.c.l.s4 %v429_v1  ;;  %s373_s11 = sshll.u32 %s498_s10, 1  ;;  %v431_v22 = vmov 1966171168   ;;  %s173_s17 = scalar_lea.vmem %s490_s1, %s498_s10 }
   0xe   : > { %vm460_vm0 = vcmp.lt.s32.totalorder %v179_v0, 512  ;;  %v192_v4 = vshrl.u32 %v179_v0, 7  ;;  %s164_s14 = scalar_lea.vmem %s489_s0, %s373_s11  ;;  %v244_v23 = vunpack.c.l.s4 %v431_v22 }
   0xf   : > { %183 = vst.msk [vmem:[#allocation2] sm:$0xf] %vm460_vm0, %v430_v5  ;;  %v190_v6 = vunpack.c.0.s8 %v189_v2  ;;  %v184_v8 = vld [vmem:[%s164_s14] sm:$0xff] }
  0x10   : > { %v187_v9 = vcombine.high %v184_v8, %v184_v8  ;;  %v245_v32 = vunpack.c.0.s8 %v244_v23 }
  0x11   : > { %v193_v7 = vsub.s32 %v190_v6, %v192_v4 }
  0x12   : > { %v248_v41 = vsub.s32 %v245_v32, %v192_v4 }
  0x13   : > { %v194_v10 = vrot.slane %v184_v8, %v193_v7  ;;  %v201_v11 = vrot.slane %v187_v9, %v193_v7 }
  0x15   : > { %v202_v12 = vcombine.high %v194_v10, %v194_v10  ;;  %v209_v13 = vsel %vm208_vm1, %v194_v10, 0.0  ;;  %v203_v15 = vcombine.high %v201_v11, %v201_v11  ;;  %v223_v17 = vsel %vm208_vm1, %v201_v11, 0.0 }
  0x16   : > { %v210_v14 = vrot.slane %v209_v13, 4  ;;  %v224_v20 = vrot.slane %v223_v17, 4  ;;  %v185_v51 = vld [vmem:[#allocation2] sm:$0xf] }
  0x17   : > { %v216_v16 = vsel %vm208_vm1, %v202_v12, 0.0  ;;  %v230_v21 = vsel %vm208_vm1, %v203_v15, 0.0 }
  0x18   : > { %v211_v18 = vadd.f32 %v210_v14, %v209_v13  ;;  %v217_v19 = vrot.slane %v216_v16, 4  ;;  %v225_v26 = vadd.f32 %v224_v20, %v223_v17  ;;  %v231_v27 = vrot.slane %v230_v21, 4 }
  0x1a   : > { %v212_v24 = vrot.slane %v211_v18, 2  ;;  %v218_v25 = vadd.f32 %v217_v19, %v216_v16  ;;  %v226_v30 = vrot.slane %v225_v26, 2  ;;  %v232_v31 = vadd.f32 %v231_v27, %v230_v21 }
  0x1c   : > { %v213_v28 = vadd.f32 %v212_v24, %v211_v18  ;;  %v219_v29 = vrot.slane %v218_v25, 2  ;;  %v227_v33 = vadd.f32 %v226_v30, %v225_v26  ;;  %v233_v34 = vrot.slane %v232_v31, 2 }
  0x1e   : > { %v214_v35 = vrot.slane %v213_v28, 1  ;;  %v220_v36 = vadd.f32 %v219_v29, %v218_v25  ;;  %v228_v39 = vrot.slane %v227_v33, 1  ;;  %v234_v40 = vadd.f32 %v233_v34, %v232_v31 }
  0x20   : > { %v215_v37 = vadd.f32 %v214_v35, %v213_v28  ;;  %v221_v38 = vrot.slane %v220_v36, 1  ;;  %v229_v43 = vadd.f32 %v228_v39, %v227_v33  ;;  %v235_v44 = vrot.slane %v234_v40, 1 }
  0x22   : > { %v222_v42 = vadd.f32 %v221_v38, %v220_v36  ;;  %v236_v45 = vadd.f32 %v235_v44, %v234_v40 }
  0x24   : > { %v241_v46 = vcombine.low %v215_v37, %v222_v42  ;;  %v242_v47 = vcombine.low %v229_v43, %v236_v45 }
  0x26   : > { %v249_v48 = vrot.slane %v241_v46, %v248_v41  ;;  %v256_v49 = vrot.slane %v242_v47, %v248_v41 }
  0x28   : > { %v257_v50 = vcombine.low %v249_v48, %v256_v49 }
  0x2a   : > { %v264_v52 = vrot.slane %v257_v50, %v248_v41 }
  0x2c   : > { %v266_v53 = vadd.f32 %v264_v52, %v185_v51 }
  0x2e   : > { %271 = vst.msk [vmem:[#allocation2] sm:$0xf] %vm460_vm0, %v266_v53 }
  0x35   : > { %v275_v54 = vld [vmem:[#allocation2] sm:$0xf] }
  0x36   : > { %276 = vst.msk [vmem:[%s173_s17] sm:$0xf] %vm460_vm0, %v275_v54 }
  0x37 PF: > { %s11_s8 = sadd.s32 1, %s427_s8   ;;  %s493_s6 = smov %s423_s7 }
  0x38   : > { %p8_p5 = scmp.ge.s32.totalorder %s11_s8, 4   ;;  %s494_s7 = smov %s496_s9 }
  0x3a   :  { %10 = sbr.rel (!%p8_p5) target bundleno = 2 (0x2), region = 62 }

</bundles_post_ra>
